<compile_context>
chip_gen: v7x
topology: tpu7x:2x2x1
jax: 0.10.0
libtpu: 0.0.40
codegen_flags: <defaults>
</compile_context>

<pallas_src>
import math

import jax
import jax.numpy as jnp
import numpy as np
from jax.experimental import pallas as pl
from jax.experimental.pallas import tpu as pltpu

MAX_NORM = 1.0
RENORM_EPS = 1e-7  # matches torch.embedding_renorm_


def _seq_encoder_kernel(ids_ref, emb_ref, pe_ref, out_ref):
    # ids_ref: (T, 1) int32   -- token ids for this (batch, seq-tile) block
    # emb_ref: (V, D) f32     -- full embedding table, VMEM-resident
    # pe_ref:  (T, D) f32     -- positional-encoding rows for this seq tile
    # out_ref: (T, D) f32
    #
    # TODO(synk): the PyTorch module raises on ids >= num_embeddings / non-finite
    # ids; there is no Pallas equivalent of a runtime exception. Out-of-range ids
    # here simply produce an all-zero one-hot row (output = positional encoding).
    # TODO(synk): nn.Embedding(max_norm=...) also mutates the weight in place for
    # referenced rows; only the forward output is reproduced here.
    tab = emb_ref[...]                                        # (V, D)

    # max_norm renorm folded per vocab row (same forward output as per-token).
    sq = jnp.sum(tab * tab, axis=-1, keepdims=True)           # (V, 1)
    nrm = jnp.sqrt(sq)
    scale = jnp.where(nrm > MAX_NORM, MAX_NORM / (nrm + RENORM_EPS), 1.0)
    tab_scaled = tab * scale                                  # (V, D)

    ids = ids_ref[...]                                        # (T, 1) int32
    T = ids.shape[0]
    V = tab.shape[0]
    vocab_iota = jax.lax.broadcasted_iota(jnp.int32, (T, V), 1)
    one_hot = (ids == vocab_iota).astype(jnp.float32)         # (T, V)

    # One-hot gather on the MXU; HIGHEST precision keeps the gathered f32 rows
    # (near-)exact so the kernel matches the plain-gather reference.
    gathered = jnp.dot(
        one_hot,
        tab_scaled,
        preferred_element_type=jnp.float32,
        precision=jax.lax.Precision.HIGHEST,
    )                                                         # (T, D)

    out_ref[...] = gathered + pe_ref[...]


def _pick_seq_tile(S):
    """Largest token-tile size that keeps blocks (8,128)-aligned and divides S."""
    for t in (512, 256, 128):
        if S % t == 0:
            return t
    return S  # full sequence as one tile (always a legal "full dim" block)


def sequence_encoder_forward(input_ids, attention_mask, emb_table, pe_table):
    """Pallas equivalent of SequenceEncoder.forward (dropout p=0.0 -> identity)."""
    B, S = input_ids.shape
    V, D = emb_table.shape

    T = _pick_seq_tile(S)
    num_tiles = S // T

    pe_slice = pe_table[:S]                                   # (S, D)
    ids3 = input_ids.astype(jnp.int32).reshape(B, S, 1)       # (B, S, 1)

    # VMEM budget: resident table (worst-case 2 buffers) + double-buffered
    # pe / out tiles + ids tiles + compiler slack. Clamp to [32 MiB, 64 MiB]
    # so v5e's 16 MiB scoped default is raised and v7x's 64 MiB physical is
    # respected.
    table_bytes = V * D * 4
    tile_bytes = T * D * 4
    vmem_needed = 2 * table_bytes + 4 * tile_bytes + 4 * T * 4 + (4 << 20)
    vmem_limit = int(min(64 << 20, max(32 << 20, vmem_needed)))

    grid_spec = pltpu.PrefetchScalarGridSpec(
        num_scalar_prefetch=0,
        grid=(num_tiles, B),  # seq-tile outer, batch inner (pe block reused across b)
        in_specs=[
            # token ids for this (batch, seq-tile): (T, 1) block, batch squeezed
            pl.BlockSpec((None, T, 1), lambda t, b: (b, t, 0)),
            # full embedding table, constant block index -> stays resident in VMEM
            pl.BlockSpec((V, D), lambda t, b: (0, 0)),
            # positional-encoding rows for this seq tile
            pl.BlockSpec((T, D), lambda t, b: (t, 0)),
        ],
        out_specs=pl.BlockSpec((None, T, D), lambda t, b: (b, t, 0)),
    )

    out = pl.pallas_call(
        _seq_encoder_kernel,
        out_shape=jax.ShapeDtypeStruct((B, S, D), jnp.float32),
        grid_spec=grid_spec,
        compiler_params=pltpu.CompilerParams(
            dimension_semantics=("parallel", "parallel"),
            vmem_limit_bytes=vmem_limit,
        ),
    )(ids3, emb_table, pe_slice)

    return out, attention_mask


def build_positional_table(max_len, d_model):
    position = jnp.arange(max_len, dtype=jnp.float32)[:, None]
    div_term = jnp.exp(
        jnp.arange(0, d_model, 2, dtype=jnp.float32) * (-math.log(10000.0) / d_model)
    )
    ang = position * div_term
    pe = jnp.zeros((max_len, d_model), jnp.float32)
    pe = pe.at[:, 0::2].set(jnp.sin(ang))
    pe = pe.at[:, 1::2].set(jnp.cos(ang))
    return pe


def reference_forward(input_ids, emb_table, pe_table):
    """Pure-JAX reference of the PyTorch forward (eval mode)."""
    rows = emb_table[input_ids]                                   # (B, S, D)
    nrm = jnp.sqrt(jnp.sum(rows * rows, axis=-1, keepdims=True))
    scale = jnp.where(nrm > MAX_NORM, MAX_NORM / (nrm + RENORM_EPS), 1.0)
    x_t = rows * scale
    x_p = pe_table[: input_ids.shape[1]][None]                    # (1, S, D)
    return x_t + x_p


if __name__ == "__main__":
    # Small synthetic config (module defaults are 400 / 512 / 1024).
    # S=384 with D=128 exercises real multi-tile gridding (T=128, 3 seq tiles).
    B, S = 2, 384
    num_embeddings, embedding_dim, max_tokens, padding_token = 64, 128, 512, 0

    key = jax.random.PRNGKey(0)
    k_emb, k_ids = jax.random.split(key)

    # nn.Embedding init ~ N(0, 1); padding_idx row zeroed at init.
    emb_table = jax.random.normal(k_emb, (num_embeddings, embedding_dim), jnp.float32)
    emb_table = emb_table.at[padding_token].set(0.0)

    pe_table = build_positional_table(max_tokens, embedding_dim)

    input_ids = jax.random.randint(k_ids, (B, S), 0, num_embeddings, dtype=jnp.int32)
    input_ids = input_ids.at[:, -2:].set(padding_token)  # exercise padding rows
    attention_mask = jnp.ones((B, S), dtype=jnp.int32)

    out, mask = sequence_encoder_forward(input_ids, attention_mask, emb_table, pe_table)
    out = jax.block_until_ready(out)

    ref = reference_forward(input_ids, emb_table, pe_table)
    np.testing.assert_allclose(np.asarray(out), np.asarray(ref), rtol=1e-5, atol=1e-5)
    assert out.shape == (B, S, embedding_dim) and mask.shape == (B, S)

    print("KERNEL_OK")
</pallas_src>

<mosaic_0001>
module attributes {stable_mosaic.version = 11 : i64} {
  func.func @_seq_encoder_kernel(%arg0: i32, %arg1: i32, %arg2: memref<1x128x1xi32, #tpu.memory_space<vmem>>, %arg3: memref<64x128xf32, #tpu.memory_space<vmem>>, %arg4: memref<128x128xf32, #tpu.memory_space<vmem>>, %arg5: memref<1x128x128xf32, #tpu.memory_space<vmem>>) attributes {dimension_semantics = [#tpu.dimension_semantics<parallel>, #tpu.dimension_semantics<parallel>], iteration_bounds = array<i64: 3, 2>, scalar_prefetch = 0 : i64, scratch_operands = 0 : i64, tpu.core_type = #tpu.core_type<tc>, window_params = [{transform_indices = @transform_0, window_bounds = array<i64: 1, 128, 1>}, {pipeline_mode = #tpu.pipeline_mode<synchronous>, transform_indices = @transform_1, window_bounds = array<i64: 64, 128>}, {transform_indices = @transform_2, window_bounds = array<i64: 128, 128>}, {transform_indices = @transform_3, window_bounds = array<i64: 1, 128, 128>}]} {
    %c0 = arith.constant 0 : index
    %c0_0 = arith.constant 0 : index
    %0 = vector.load %arg3[%c0, %c0_0] : memref<64x128xf32, #tpu.memory_space<vmem>>, vector<64x128xf32>
    %1 = arith.mulf %0, %0 : vector<64x128xf32>
    %cst = arith.constant dense<0.000000e+00> : vector<64xf32>
    %2 = vector.multi_reduction <add>, %1, %cst [1] : vector<64x128xf32> to vector<64xf32>
    %3 = vector.shape_cast %2 : vector<64xf32> to vector<64x1xf32>
    %4 = math.sqrt %3 : vector<64x1xf32>
    %cst_1 = arith.constant 1.000000e+00 : f32
    %5 = vector.broadcast %cst_1 : f32 to vector<64x1xf32>
    %6 = arith.cmpf ogt, %4, %5 : vector<64x1xf32>
    %cst_2 = arith.constant 1.000000e-07 : f32
    %7 = vector.broadcast %cst_2 : f32 to vector<64x1xf32>
    %8 = arith.addf %4, %7 : vector<64x1xf32>
    %cst_3 = arith.constant 1.000000e+00 : f32
    %9 = vector.broadcast %cst_3 : f32 to vector<64x1xf32>
    %10 = arith.divf %9, %8 : vector<64x1xf32>
    %cst_4 = arith.constant 1.000000e+00 : f32
    %11 = vector.broadcast %cst_4 : f32 to vector<64x1xf32>
    %12 = arith.select %6, %10, %11 : vector<64x1xi1>, vector<64x1xf32>
    %13 = vector.broadcast %12 : vector<64x1xf32> to vector<64x128xf32>
    %14 = arith.mulf %0, %13 : vector<64x128xf32>
    %c0_5 = arith.constant 0 : index
    %c0_6 = arith.constant 0 : index
    %c0_7 = arith.constant 0 : index
    %15 = vector.load %arg2[%c0_5, %c0_6, %c0_7] : memref<1x128x1xi32, #tpu.memory_space<vmem>>, vector<1x128x1xi32>
    %16 = vector.shape_cast %15 : vector<1x128x1xi32> to vector<128x1xi32>
    %17 = tpu.iota {dimensions = array<i32: 1>} : vector<128x64xi32>
    %18 = vector.broadcast %16 : vector<128x1xi32> to vector<128x64xi32>
    %19 = arith.cmpi eq, %18, %17 : vector<128x64xi32>
    %20 = arith.extui %19 : vector<128x64xi1> to vector<128x64xi32>
    %21 = arith.sitofp %20 : vector<128x64xi32> to vector<128x64xf32>
    %cst_8 = arith.constant dense<0.000000e+00> : vector<128x128xf32>
    %22 = tpu.matmul %21, %14, %cst_8 {dimension_numbers = #tpu.dot_dimension_numbers<[1], [0], [0], [1], [0, 0, 1, 1], [], []>, precision = #tpu.contract_precision<fp32>} : vector<128x64xf32>, vector<64x128xf32>, vector<128x128xf32> -> vector<128x128xf32>
    %c0_9 = arith.constant 0 : index
    %c0_10 = arith.constant 0 : index
    %23 = vector.load %arg4[%c0_9, %c0_10] : memref<128x128xf32, #tpu.memory_space<vmem>>, vector<128x128xf32>
    %24 = arith.addf %22, %23 : vector<128x128xf32>
    %c0_11 = arith.constant 0 : index
    %c0_12 = arith.constant 0 : index
    %c0_13 = arith.constant 0 : index
    %25 = vector.load %arg5[%c0_11, %c0_12, %c0_13] : memref<1x128x128xf32, #tpu.memory_space<vmem>>, vector<1x128x128xf32>
    %26 = vector.shape_cast %25 : vector<1x128x128xf32> to vector<128x128xf32>
    %27 = vector.shape_cast %24 : vector<128x128xf32> to vector<1x128x128xf32>
    tpu.vector_store %arg5[%c0_11, %c0_12, %c0_13], %27 {strides = array<i32>} : memref<1x128x128xf32, #tpu.memory_space<vmem>>, vector<1x128x128xf32>,
    return
  }
  func.func @transform_0(%arg0: i32, %arg1: i32) -> (i32, i32, i32) {
    %c0_i32 = arith.constant 0 : i32
    %c0_i32_0 = arith.constant 0 : i32
    return %arg1, %arg0, %c0_i32 : i32, i32, i32
  }
  func.func @transform_1(%arg0: i32, %arg1: i32) -> (i32, i32) {
    %c0_i32 = arith.constant 0 : i32
    %c0_i32_0 = arith.constant 0 : i32
    %c0_i32_1 = arith.constant 0 : i32
    return %c0_i32, %c0_i32_0 : i32, i32
  }
  func.func @transform_2(%arg0: i32, %arg1: i32) -> (i32, i32) {
    %c0_i32 = arith.constant 0 : i32
    %c0_i32_0 = arith.constant 0 : i32
    return %arg0, %c0_i32 : i32, i32
  }
  func.func @transform_3(%arg0: i32, %arg1: i32) -> (i32, i32, i32) {
    %c0_i32 = arith.constant 0 : i32
    %c0_i32_0 = arith.constant 0 : i32
    return %arg1, %arg0, %c0_i32 : i32, i32, i32
  }
}

</mosaic_0001>

<bundles_post_ra>
// kernel: tpu_custom_call.1
= control target key start
LH: loop header
LB: loop body
LE: loop exit
PB: predicated region body
PF: predicated region fallthrough
CT: control target
= control target key end

     0   :  { %8 = vsyncpa [#allocation3], 0  ;;  %s3525_s0 = inlined_call_operand.vmem [shape: s32[2,384,1], index: 0, kind: input, shape index: {}]   ;;  %s3526_s1 = inlined_call_operand.vmem [shape: f32[64,128], index: 1, kind: input, shape index: {}]   ;;  %s3527_s2 = inlined_call_operand.vmem [shape: f32[384,128], index: 2, kind: input, shape index: {}]   ;;  %s3528_s3 = inlined_call_operand.hbm [shape: f32[2,384,128], index: 3, kind: output, shape index: {}]  }
   0x1   :  { %10 = vsyncpa [#allocation3 + $0x1], 0  ;;  %s2732_s12 = smov 0   ;;  %s2734_s13 = smov 0  }
   0x2   :  { %s2736_s14 = smov 0   ;;  %s2738_s15 = smov 0  }
   0x3   :  { %s2740_s16 = smov 0   ;;  %s2742_s17 = smov 0  }
   0x4   :  { %s2744_s18 = smov 0   ;;  %s2746_s19 = smov 0  }
   0x5 LB: > { %s1845_s20 = sadd.s32 4294967295, %s2705_s19   ;;  %s1846_s21 = sadd.s32 4294967294, %s2705_s19   ;;  %s2705_s19 = sphi %s2746_s19, %s16_s19   ;;  %s2701_s18 = sphi %s2744_s18, %s3552_s18   ;;  %s2697_s17 = sphi %s2742_s17, %s3551_s17   ;;  %s2693_s16 = sphi %s2740_s16, %s3550_s16   ;;  %s2689_s15 = sphi %s2738_s15, %s3549_s15   ;;  %s2685_s14 = sphi %s2736_s14, %s3548_s14   ;;  %s2681_s13 = sphi %s2734_s13, %s3547_s13   ;;  %s2677_s12 = sphi %s2732_s12, %s3546_s12  }
   0x6   : > { %s25_s22 = sadd.s32 1, %s2697_s17  ;;  %s28_s23 = sadd.s32 1, %s2701_s18 }
   0x7   : > { %p26_p0 = scmp.ge.s32.totalorder %s25_s22, 2  ;;  %p122_p1 = scmp.ne.s32.totalorder %s2685_s14, %s2681_s13 }
   0x8   : > { %p123_p2 = scmp.eq.s32.totalorder %s1845_s20, 5  ;;  %p128_p5 = scmp.ne.s32.totalorder %s2681_s13, %s2677_s12 }
   0x9   : > { %s3554_s22 = smov (%p26_p0, %s25_s22), 0  ;;  %s3556_s23 = smov (!%p26_p0, %s28_s23), %s2701_s18 }
   0xa   : > { %s107_s24 = ssub.s32 %s2697_s17, %s3554_s22  ;;  %p2783_p3 = por %p123_p2, %p122_p1 }
   0xb   : > { %p30_p4 = scmp.ge.s32.totalorder %s3556_s23, 3  ;;  %p129_p6 = scmp.eq.s32.totalorder %s1846_s21, 5 }
   0xc   : > { %p1849_p7 = scmp.ge.s32.totalorder %s2705_s19, 1  ;;  %p172_p9 = scmp.lt.s32.totalorder %s2705_s19, 7 }
   0xd   : > { %s3558_s23 = smov (%p30_p4, %s3556_s23), 0  ;;  %p2792_p8 = por %p129_p6, %p128_p5 }
   0xe   : > { %s108_s27 = ssub.s32 %s2701_s18, %s3558_s23  ;;  %s112_s28 = sadd.s32 1, %s2685_s14 }
   0xf   : > { %s109_s29 = sor.u32 %s108_s27, %s107_s24  ;;  %p173_p10 = pnand %p1849_p7, %p172_p9 }
  0x10   : > { %p110_p11 = scmp.eq.s32.totalorder %s109_s29, 0 }
  0x11   : > { %176 = sbr.rel (%p173_p10) target bundleno = 549 (0x225), region = 32 }
  0x12   : > { %s2801_s30 = scalar_select %p110_p11, %s2685_s14, %s112_s28  }
  0x18   : > { %v2806_v0 = vld [vmem:[%s3526_s1 + $0x10] sm:$0xff]  ;;  %v2811_v1 = vld [vmem:[%s3526_s1] sm:$0xff]  ;;  %v2816_v2 = vld [vmem:[%s3526_s1 + $0x18] sm:$0xff]  ;;  %v2707_v6 = vmov 0   ;;  %s2856_s6 = sshll.u32 %s2693_s16, 4  ;;  %p206_p12 = scmp.lt.s32.totalorder %s2689_s15, 1  ;;  %v374_v37 = vlaneseq }
  0x19   : > { %v232_v3 = vmul.f32 %v2806_v0, %v2806_v0  ;;  %v230_v4 = vmul.f32 %v2811_v1, %v2811_v1  ;;  %v2825_v5 = vld [vmem:[%s3526_s1 + $0x8] sm:$0xff]  ;;  %2578 = vset.pattern.permute.xlu1 %v2707_v6  ;;  %2577 = vset.pattern.permute.xlu0 %v2707_v6  ;;  %v233_v7 = vmul.f32 %v2816_v2, %v2816_v2  ;;  %v2839_v10 = vld [vmem:[%s3526_s1 + $0x20] sm:$0xff]  ;;  %v2848_v13 = vld [vmem:[%s3526_s1 + $0x38] sm:$0xff]  ;;  %p208_p13 = scmp.lt.s32.totalorder %s2856_s6, 47  ;;  %vm488_vm10 = vcmask 523264   ;;  %s202_s4 = sand.u32 1, %s2681_s13  }
  0x1a   : > { %v231_v8 = vmul.f32 %v2825_v5, %v2825_v5  ;;  %v2834_v9 = vld [vmem:[%s3526_s1 + $0x28] sm:$0xff]  ;;  %v234_v12 = vmul.f32 %v2839_v10, %v2839_v10  ;;  %v2853_v14 = vld [vmem:[%s3526_s1 + $0x30] sm:$0xff]  ;;  %v237_v15 = vmul.f32 %v2848_v13, %v2848_v13  ;;  %s207_s7 = scalar_select %p206_p12, %s2689_s15, 1  ;;  %v2896_v40 = vand.u32 127, %v374_v37 }
  0x1b   : > { %242 = vadd.xlane.f32.xlu1 %v232_v3  ;;  %238 = vadd.xlane.f32.xlu0 %v230_v4  ;;  %v235_v11 = vmul.f32 %v2834_v9, %v2834_v9  ;;  %v236_v16 = vmul.f32 %v2853_v14, %v2853_v14  ;;  %s2866_s8 = scalar_select %p208_p13, %s2856_s6, 47 }
  0x1c   : > { %s2500_s16 = smul.u32 48, %s207_s7  ;;  %s1850_s5 = sshll.u32 %s202_s4, 7 }
  0x1d   : > { %s1854_s24 = sshll.u32 %s2866_s8, 3  ;;  %s3431_s7 = scalar_lea.vmem [#allocation2], %s1850_s5 }
  0x1e   : > { %s211_s9 = sadd.s32 %s2500_s16, %s2866_s8  ;;  %s3422_s29 = scalar_lea.vmem %s3527_s2, %s1854_s24 }
  0x1f   : > { %244 = vadd.xlane.f32.xlu1 %v233_v7  ;;  %240 = vadd.xlane.f32.xlu0 %v231_v8  ;;  %s1852_s10 = sshll.u32 %s211_s9, 3  ;;  %s2501_s8 = smul.u32 48, %s2689_s15 }
  0x20   : > { %s2872_s21 = scalar_lea.vmem %s3525_s0, %s1852_s10  ;;  %s3473_s20 = scalar_lea.sflag [#allocation3], %s202_s4 }
  0x21   : > { %v359_v17 = vld [vmem:[%s2872_s21 + $0x8] sm:$0xff]  ;;  %v360_v18 = vld [vmem:[%s2872_s21 + $0x10] sm:$0xff]  ;;  %v358_v19 = vld [vmem:[%s2872_s21] sm:$0xff]  ;;  %s1748_s16 = sadd.s32 %s2501_s8, %s2856_s6  ;;  %s1751_s6 = sshll.u32 %s3431_s7, 4  ;;  %s3467_s6 = int_to_ptr.vmem [resolvable:$true] %s1751_s6 }
  0x22   : > { %v361_v20 = vld [vmem:[%s2872_s21 + $0x18] sm:$0xff]  ;;  %v367_v21 = vld [vmem:[%s2872_s21 + $0x48] sm:$0xff]  ;;  %v362_v22 = vld [vmem:[%s2872_s21 + $0x20] sm:$0xff]  ;;  %s1921_s15 = sshll.u32 %s1748_s16, 7  ;;  %s2709_s24 = smov [#allocation2]  }
  0x23   : > { %248 = vadd.xlane.f32.xlu1 %v235_v11  ;;  %246 = vadd.xlane.f32.xlu0 %v234_v12  ;;  %v369_v23 = vld [vmem:[%s2872_s21 + $0x58] sm:$0xff]  ;;  %v363_v24 = vld [vmem:[%s2872_s21 + $0x28] sm:$0xff]  ;;  %v364_v26 = vld [vmem:[%s2872_s21 + $0x30] sm:$0xff]  ;;  %s3464_s11 = scalar_lea.hbm %s3528_s3, %s1921_s15  ;;  %s2615_s27 = sshll.u32 %s2709_s24, 4  ;;  %s2616_s27 = int_to_ptr.vmem [resolvable:$false] %s2615_s27 }
  0x24   : > { %v371_v25 = vld [vmem:[%s2872_s21 + $0x68] sm:$0xff]  ;;  %v373_v27 = vld [vmem:[%s2872_s21 + $0x78] sm:$0xff]  ;;  %v366_v29 = vld [vmem:[%s2872_s21 + $0x40] sm:$0xff]  ;;  %s2617_s28 = scalar_lea.vmem %s2616_s27, 4096  ;;  %p2618_p4 = scmp.lt.s32.totalorder %s3467_s6, %s2616_s27 }
  0x25   : > { %v365_v28 = vld [vmem:[%s2872_s21 + $0x38] sm:$0xff]  ;;  %v368_v30 = vld [vmem:[%s2872_s21 + $0x50] sm:$0xff]  ;;  %v370_v31 = vld [vmem:[%s2872_s21 + $0x60] sm:$0xff] }
  0x26   : > { %v372_v32 = vld [vmem:[%s2872_s21 + $0x70] sm:$0xff]  ;;  %s2611_s21 = scalar_lea.vmem %s3467_s6, 2048 }
  0x27   : > { %252 = vadd.xlane.f32.xlu1 %v237_v15  ;;  %250 = vadd.xlane.f32.xlu0 %v236_v16  ;;  %p2612_p0 = scmp.ne.s32.totalorder %s3467_s6, %s2611_s21  ;;  %p2619_p5 = scmp.lt.s32.totalorder %s2617_s28, %s2611_s21 }
  0x29   : > { %p2613_p1 = pnand %p2612_p0, %p2783_p3  ;;  %p2620_p6 = por %p2619_p5, %p2618_p4 }
  0x2b   : > { %p2614_p2 = pneg %p2613_p1 }
  0x2d   : > { %p2621_p7 = pnand %p2620_p6, %p2614_p2 }
  0x38   : > { %380 = vperm.xlu1 %2578, %v359_v17  }
  0x3c   : > { %383 = vperm.xlu1 %2578, %v360_v18  }
  0x3d   : > { %377 = vperm.xlu0 %2577, %v358_v19  }
  0x40   : > { %386 = vperm.xlu1 %2578, %v361_v20  }
  0x41   : > { %404 = vperm.xlu0 %2577, %v367_v21  }
  0x44   : > { %389 = vperm.xlu1 %2578, %v362_v22  }
  0x45   : > { %410 = vperm.xlu0 %2577, %v369_v23  }
  0x48   : > { %392 = vperm.xlu1 %2578, %v363_v24  }
  0x49   : > { %416 = vperm.xlu0 %2577, %v371_v25  }
  0x4c   : > { %395 = vperm.xlu1 %2578, %v364_v26  }
  0x4d   : > { %422 = vperm.xlu0 %2577, %v373_v27  }
  0x50   : > { %398 = vperm.xlu1 %2578, %v365_v28  }
  0x54   : > { %401 = vperm.xlu1 %2578, %v366_v29  }
  0x58   : > { %407 = vperm.xlu1 %2578, %v368_v30   ;;  %v3531_v30 = vmov 0.0  }
  0x5c   : > { %413 = vperm.xlu1 %2578, %v370_v31  }
  0x60   : > { %419 = vperm.xlu1 %2578, %v372_v32  }
  0xa8   : > { %v243_v33 = vpop.xlane.xlu1 %242  ;;  %v239_v34 = vpop.xlane.xlu0 %238 }
  0xa9   : > { %2579 = vrsqrt.f32 %v243_v33  ;;  %vm270_vm0 = vcmp.eq.f32.partialorder %v243_v33, inf  ;;  %vm272_vm1 = vcmp.eq.f32.partialorder %v243_v33, 0.0  ;;  %v273_v42 = vand.u32 2147483648, %v243_v33 }
  0xaa   : > { %2581 = vrsqrt.f32 %v239_v34  ;;  %vm256_vm2 = vcmp.eq.f32.partialorder %v239_v34, inf  ;;  %vm258_vm3 = vcmp.eq.f32.partialorder %v239_v34, 0.0  ;;  %v259_v45 = vand.u32 2147483648, %v239_v34 }
  0xac   : > { %v245_v35 = vpop.xlane.xlu1 %244  ;;  %v241_v36 = vpop.xlane.xlu0 %240 }
  0xad   : > { %2583 = vrsqrt.f32 %v245_v35  ;;  %vm277_vm4 = vcmp.eq.f32.partialorder %v245_v35, inf  ;;  %vm279_vm5 = vcmp.eq.f32.partialorder %v245_v35, 0.0  ;;  %v280_v49 = vand.u32 2147483648, %v245_v35 }
  0xae   : > { %2585 = vrsqrt.f32 %v241_v36  ;;  %vm263_vm6 = vcmp.eq.f32.partialorder %v241_v36, inf  ;;  %vm265_vm7 = vcmp.eq.f32.partialorder %v241_v36, 0.0  ;;  %v266_v51 = vand.u32 2147483648, %v241_v36 }
  0xb0   : > { %v2890_v38 = vpop.xlane.xlu1 %248  ;;  %v2892_v39 = vpop.xlane.xlu0 %246 }
  0xb1   : > { %2587 = vrsqrt.f32 %v2890_v38  ;;  %vm291_vm8 = vcmp.eq.f32.partialorder %v2890_v38, inf  ;;  %vm293_vm9 = vcmp.eq.f32.partialorder %v2890_v38, 0.0  ;;  %v294_v59 = vand.u32 2147483648, %v2890_v38 }
  0xb2   : > { %2589 = vrsqrt.f32 %v2892_v39  ;;  %vm284_vm11 = vcmp.eq.f32.partialorder %v2892_v39, inf  ;;  %vm286_vm12 = vcmp.eq.f32.partialorder %v2892_v39, 0.0  ;;  %v287_v3 = vand.u32 2147483648, %v2892_v39 }
  0xb3   : > { %v2580_v41 = vpop.eup %2579 }
  0xb4   : > { %v2582_v43 = vpop.eup %2581  ;;  %v269_v44 = vmul.f32 %v2580_v41, %v243_v33  ;;  %v2898_v46 = vpop.xlane.xlu1 %252 }
  0xb5   : > { %v2900_v47 = vpop.xlane.xlu0 %250  ;;  %v255_v48 = vmul.f32 %v2582_v43, %v239_v34  ;;  %2591 = vrsqrt.f32 %v2898_v46  ;;  %vm305_vm13 = vcmp.eq.f32.partialorder %v2898_v46, inf  ;;  %vm307_vm14 = vcmp.eq.f32.partialorder %v2898_v46, 0.0 }
  0xb6   : > { %v271_v50 = vsel %vm270_vm0, %v243_v33, %v269_v44  ;;  %2593 = vrsqrt.f32 %v2900_v47  ;;  %v308_v16 = vand.u32 2147483648, %v2898_v46  ;;  %vm298_vm15 = vcmp.eq.f32.partialorder %v2900_v47, inf }
  0xb7   : > { %v2584_v52 = vpop.eup %2583  ;;  %v2906_v53 = vsel %vm272_vm1, %v273_v42, %v271_v50  ;;  %v257_v54 = vsel %vm256_vm2, %v239_v34, %v255_v48  ;;  %vm300_vm1 = vcmp.eq.f32.partialorder %v2900_v47, 0.0  ;;  %v301_v22 = vand.u32 2147483648, %v2900_v47 }
  0xb8   : > { %v2586_v55 = vpop.eup %2585  ;;  %v320_v56 = vadd.f32 1e-07, %v2906_v53  ;;  %v2913_v57 = vsel %vm258_vm3, %v259_v45, %v257_v54  ;;  %v276_v58 = vmul.f32 %v2584_v52, %v245_v35  ;;  %v381_v60 = vpop.permute.xlu1 %380  ;;  %vm312_vm3 = vcmp.gt.f32.partialorder %v2906_v53, 1.0 }
  0xb9   : > { %v318_v61 = vadd.f32 1e-07, %v2913_v57  ;;  %v262_v62 = vmul.f32 %v2586_v55, %v241_v36  ;;  %vm425_vm0 = vcmp.eq.s32.totalorder %v381_v60, %v2896_v40 }
  0xba   : > { %2595 = vrcp.f32 %v320_v56  ;;  %v278_v63 = vsel %vm277_vm4, %v245_v35, %v276_v58  ;;  %v2957_v31 = vsel %vm425_vm0, 1.0, %v3531_v30  ;;  %vm310_vm4 = vcmp.gt.f32.partialorder %v2913_v57, 1.0 }
  0xbb   : > { %v2588_v4 = vpop.eup %2587  ;;  %2597 = vrcp.f32 %v318_v61  ;;  %v2923_v6 = vsel %vm279_vm5, %v280_v49, %v278_v63  ;;  %v264_v7 = vsel %vm263_vm6, %v241_v36, %v262_v62  ;;  %v493_v41 = vsel %vm488_vm10, %v2957_v31, 0 }
  0xbc   : > { %v2590_v8 = vpop.eup %2589  ;;  %v321_v11 = vadd.f32 1e-07, %v2923_v6  ;;  %v2929_v12 = vsel %vm265_vm7, %v266_v51, %v264_v7  ;;  %v290_v15 = vmul.f32 %v2588_v4, %v2890_v38  ;;  %v384_v17 = vpop.permute.xlu1 %383  ;;  %vm313_vm6 = vcmp.gt.f32.partialorder %v2923_v6, 1.0 }
  0xbd   : > { %v378_v18 = vpop.permute.xlu0 %377  ;;  %v319_v19 = vadd.f32 1e-07, %v2929_v12  ;;  %v283_v20 = vmul.f32 %v2590_v8, %v2892_v39  ;;  %vm426_vm2 = vcmp.eq.s32.totalorder %v384_v17, %v2896_v40  ;;  %vm311_vm7 = vcmp.gt.f32.partialorder %v2929_v12, 1.0 }
  0xbe   : > { %2599 = vrcp.f32 %v321_v11  ;;  %v292_v21 = vsel %vm291_vm8, %v2890_v38, %v290_v15  ;;  %v2967_v36 = vsel %vm426_vm2, 1.0, %v3531_v30  ;;  %vm424_vm8 = vcmp.eq.s32.totalorder %v378_v18, %v2896_v40 }
  0xbf   : > { %v2592_v23 = vpop.eup %2591  ;;  %2601 = vrcp.f32 %v319_v19  ;;  %v2944_v24 = vsel %vm293_vm9, %v294_v59, %v292_v21  ;;  %v285_v25 = vsel %vm284_vm11, %v2892_v39, %v283_v20  ;;  %v496_v50 = vsel %vm488_vm10, %v2967_v36, 0 }
  0xc0   : > { %v2594_v26 = vpop.eup %2593  ;;  %v323_v27 = vadd.f32 1e-07, %v2944_v24  ;;  %v2953_v28 = vsel %vm286_vm12, %v287_v3, %v285_v25  ;;  %v304_v29 = vmul.f32 %v2592_v23, %v2898_v46  ;;  %v387_v32 = vpop.permute.xlu1 %386  ;;  %vm315_vm9 = vcmp.gt.f32.partialorder %v2944_v24, 1.0 }
  0xc1   : > { %v322_v33 = vadd.f32 1e-07, %v2953_v28  ;;  %v297_v34 = vmul.f32 %v2594_v26, %v2900_v47  ;;  %vm427_vm5 = vcmp.eq.s32.totalorder %v387_v32, %v2896_v40  ;;  %v405_v37 = vpop.permute.xlu0 %404  ;;  %vm314_vm11 = vcmp.gt.f32.partialorder %v2953_v28, 1.0 }
  0xc2   : > { %2603 = vrcp.f32 %v323_v27  ;;  %v306_v35 = vsel %vm305_vm13, %v2898_v46, %v304_v29  ;;  %v2986_v45 = vsel %vm427_vm5, 1.0, %v3531_v30  ;;  %v3007_v57 = vsub.f32 %v496_v50, %v496_v50 }
  0xc3   : > { %2605 = vrcp.f32 %v322_v33  ;;  %v2972_v38 = vsel %vm307_vm14, %v308_v16, %v306_v35  ;;  %v299_v39 = vsel %vm298_vm15, %v2900_v47, %v297_v34  ;;  %v2996_v47 = vsub.f32 %v493_v41, %v493_v41 }
  0xc4   : > { %v2596_v42 = vpop.eup %2595  ;;  %v325_v43 = vadd.f32 1e-07, %v2972_v38  ;;  %v2983_v44 = vsel %vm300_vm1, %v301_v22, %v299_v39  ;;  %v390_v46 = vpop.permute.xlu1 %389  ;;  %v499_v54 = vsel %vm488_vm10, %v2986_v45, 0  ;;  %vm317_vm12 = vcmp.gt.f32.partialorder %v2972_v38, 1.0 }
  0xc5   : > { %v2598_v48 = vpop.eup %2597  ;;  %v324_v49 = vadd.f32 1e-07, %v2983_v44  ;;  %v344_v52 = vsel %vm312_vm3, %v2596_v42, 1.0  ;;  %v3010_v58 = vsel %vm424_vm8, 1.0, %v3531_v30  ;;  %v411_v53 = vpop.permute.xlu0 %410  ;;  %vm316_vm13 = vcmp.gt.f32.partialorder %v2983_v44, 1.0 }
  0xc6   : > { %v342_v51 = vsel %vm310_vm4, %v2598_v48, 1.0  ;;  %2607 = vrcp.f32 %v325_v43  ;;  %vm428_vm14 = vcmp.eq.s32.totalorder %v390_v46, %v2896_v40  ;;  %vm433_vm15 = vcmp.eq.s32.totalorder %v405_v37, %v2896_v40 }
  0xc7   : > { %2609 = vrcp.f32 %v324_v49  ;;  %v3004_v56 = vmul.f32 %v342_v51, %v2811_v1  ;;  %v3018_v1 = vmul.f32 %v344_v52, %v2806_v0  ;;  %v3025_v3 = vsub.f32 %v499_v54, %v499_v54 }
  0xc8   : > { %v2600_v55 = vpop.eup %2599  ;;  %v393_v59 = vpop.permute.xlu1 %392  ;;  %v490_v6 = vsel %vm488_vm10, %v3010_v58, 0  ;;  %vm435_vm1 = vcmp.eq.s32.totalorder %v411_v53, %v2896_v40  ;;  %v3037_v8 = vsel %vm428_vm14, 1.0, %v3531_v30  ;;  %v3040_v11 = vsel %vm433_vm15, 1.0, %v3531_v30 }
  0xc9   : > { %v2602_v60 = vpop.eup %2601  ;;  %v345_v61 = vsel %vm313_vm6, %v2600_v55, 1.0  ;;  %vm429_vm0 = vcmp.eq.s32.totalorder %v393_v59, %v2896_v40  ;;  %v538_v7 = vand.u32 4294901760, %v3004_v56  ;;  %v3049_v18 = vsel %vm435_vm1, 1.0, %v3531_v30  ;;  %v417_v23 = vpop.permute.xlu0 %416 }
  0xca   : > { %v3021_v62 = vmul.f32 %v345_v61, %v2816_v2  ;;  %v343_v63 = vsel %vm311_vm7, %v2602_v60, 1.0  ;;  %v3046_v17 = vsel %vm429_vm0, 1.0, %v3531_v30  ;;  %v544_v19 = vand.u32 4294901760, %v3018_v1 }
  0xcb   : > { %v3028_v4 = vmul.f32 %v343_v63, %v2825_v5  ;;  %v3057_v22 = vsub.f32 %v490_v6, %v490_v6  ;;  %v502_v25 = vsel %vm488_vm10, %v3037_v8, 0  ;;  %v517_v26 = vsel %vm488_vm10, %v3040_v11, 0 }
  0xcc   : > { %v2604_v0 = vpop.eup %2603  ;;  %v547_v2 = vand.u32 4294901760, %v3021_v62  ;;  %v396_v5 = vpop.permute.xlu1 %395  ;;  %v523_v28 = vsel %vm488_vm10, %v3049_v18, 0  ;;  %vm437_vm3 = vcmp.eq.s32.totalorder %v417_v23, %v2896_v40  ;;  %v3091_v42 = vsub.f32 %v502_v25, %v502_v25 }
  0xcd   : > { %v2606_v12 = vpop.eup %2605  ;;  %v541_v15 = vand.u32 4294901760, %v3028_v4  ;;  %v347_v16 = vsel %vm315_vm9, %v2604_v0, 1.0  ;;  %vm430_vm2 = vcmp.eq.s32.totalorder %v396_v5, %v2896_v40  ;;  %v3099_v43 = vsub.f32 %v517_v26, %v517_v26  ;;  %v423_v49 = vpop.permute.xlu0 %422 }
  0xce   : > { %v3053_v20 = vmul.f32 %v347_v16, %v2834_v9  ;;  %v346_v21 = vsel %vm314_vm11, %v2606_v12, 1.0  ;;  %v505_v9 = vsel %vm488_vm10, %v3046_v17, 0  ;;  %v3084_v37 = vpack.c.bf16 %v547_v2, %v544_v19  ;;  %3538 = vst [vmem:[#allocation5_spill] sm:$0xff] %v3091_v42 }
  0xcf   : > { %v3060_v24 = vmul.f32 %v346_v21, %v2839_v10  ;;  %v3066_v27 = vpack.c.bf16 %v541_v15, %v538_v7  ;;  %v3109_v44 = vsel %vm437_vm3, 1.0, %v3531_v30  ;;  %v3113_v46 = vsub.f32 %v505_v9, %v505_v9 }
  0xd0   : > { %v2608_v29 = vpop.eup %2607  ;;  %v399_v10 = vpop.permute.xlu1 %398  ;;  %v3533_v33 = vand.u32 4294901760, %v3053_v20  ;;  %v612_v51 = vand.u32 4294901760, %v3057_v22  ;;  %v3134_v53 = vsel %vm488_vm10, %v3109_v44, 0  ;;  %v3140_v61 = vsub.f32 %v3004_v56, %v538_v7 }
  0xd1   : > { %v2610_v32 = vpop.eup %2609  ;;  %v550_v34 = vand.u32 4294901760, %v3060_v24  ;;  %v349_v35 = vsel %vm317_vm12, %v2608_v29, 1.0  ;;  %2309 = vmatprep.subr.bf16.mxu1 %v3066_v27  ;;  %2357 = vmatprep.subr.bf16.mxu0 %v3066_v27  ;;  %vm431_vm4 = vcmp.eq.s32.totalorder %v399_v10, %v2896_v40  ;;  %vm439_vm6 = vcmp.eq.s32.totalorder %v423_v49, %v2896_v40 }
  0xd2   : > { %v3087_v39 = vmul.f32 %v349_v35, %v2848_v13  ;;  %v348_v41 = vsel %vm316_vm13, %v2610_v32, 1.0  ;;  %2311 = vmatpush3.bf16.msra.mxu1 %v3066_v27  ;;  %2359 = vmatpush3.bf16.msra.mxu0 %v3066_v27  ;;  %v3104_v13 = vsel %vm430_vm2, 1.0, %v3531_v30  ;;  %v3118_v48 = vsel %vm431_vm4, 1.0, %v3531_v30 }
  0xd3   : > { %v3097_v38 = vmul.f32 %v348_v41, %v2853_v14  ;;  %2313 = vmatprep.subr.bf16.mxu1 %v3084_v37  ;;  %2361 = vmatprep.subr.bf16.mxu0 %v3084_v37  ;;  %v3115_v14 = vsub.f32 %v523_v28, %v523_v28  ;;  %v3128_v55 = vpack.c.bf16 %v3533_v33, %v550_v34  ;;  %v508_v59 = vsel %vm488_vm10, %v3104_v13, 0 }
  0xd4   : > { %v402_v50 = vpop.permute.xlu1 %401  ;;  %v3529_v52 = vand.u32 4294901760, %v3087_v39  ;;  %v613_v60 = vsub.f32 %v3057_v22, %v612_v51  ;;  %v511_v63 = vsel %vm488_vm10, %v3118_v48, 0  ;;  %v3148_v6 = vsub.f32 %v3028_v4, %v541_v15  ;;  %2204 = vmatprep.mubr.f32.mxu0 %v612_v51 }
  0xd5   : > { %v3530_v54 = vand.u32 4294901760, %v3097_v38  ;;  %vm432_vm5 = vcmp.eq.s32.totalorder %v402_v50, %v2896_v40  ;;  %v622_v0 = vand.u32 4294901760, %v2996_v47  ;;  %v773_v7 = vand.u32 4294901760, %v3140_v61 }
  0xd6   : > { %2315 = vmatpush3.bf16.msra.mxu1 %v3084_v37  ;;  %2363 = vmatpush3.bf16.msra.mxu0 %v3084_v37  ;;  %v3152_v5 = vsel %vm432_vm5, 1.0, %v3531_v30  ;;  %v614_v56 = vand.u32 4294901760, %v613_v60  ;;  %v632_v16 = vand.u32 4294901760, %v3007_v57  ;;  %v780_v15 = vand.u32 4294901760, %v3148_v6 }
  0xd7   : > { %2317 = vmatprep.subr.bf16.mxu1 %v3128_v55  ;;  %2365 = vmatprep.subr.bf16.mxu0 %v3128_v55  ;;  %v3161_v4 = vpack.c.bf16 %v3529_v52, %v3530_v54  ;;  %v3167_v21 = vsub.f32 %v3018_v1, %v544_v19  ;;  %v3169_v23 = vsub.f32 %v508_v59, %v508_v59  ;;  %v3174_v25 = vsel %vm439_vm6, 1.0, %v3531_v30 }
  0xd8   : > { %v408_v12 = vpop.permute.xlu1 %407  ;;  %v774_v26 = vsub.f32 %v3140_v61, %v773_v7  ;;  %v3182_v29 = vsub.f32 %v3021_v62, %v547_v2  ;;  %v3184_v1 = vsub.f32 %v511_v63, %v511_v63  ;;  %v781_v9 = vsub.f32 %v3148_v6, %v780_v15  ;;  %2084 = vmatprep.mubr.f32.mxu1 %v614_v56 }
  0xd9   : > { %vm434_vm7 = vcmp.eq.s32.totalorder %v408_v12, %v2896_v40  ;;  %3539 = vst [vmem:[#allocation6_spill] sm:$0xff] %v3169_v23  ;;  %v623_v28 = vsub.f32 %v2996_v47, %v622_v0  ;;  %v514_v10 = vsel %vm488_vm10, %v3152_v5, 0  ;;  %v2372_v62 = vpack.c.bf16 %v780_v15, %v773_v7 }
  0xda   : > { %2319 = vmatpush3.bf16.msra.mxu1 %v3128_v55  ;;  %2367 = vmatpush3.bf16.msra.mxu0 %v3128_v55  ;;  %v3187_v19 = vsel %vm434_vm7, 1.0, %v3531_v30  ;;  %v633_v2 = vsub.f32 %v3007_v57, %v632_v16  ;;  %v787_v35 = vand.u32 4294901760, %v3167_v21  ;;  %v775_v41 = vand.u32 4294901760, %v774_v26 }
  0xdb   : > { %2321 = vmatprep.subr.bf16.mxu1 %v3161_v4  ;;  %2369 = vmatprep.subr.bf16.mxu0 %v3161_v4  ;;  %v782_v49 = vand.u32 4294901760, %v781_v9  ;;  %v794_v50 = vand.u32 4294901760, %v3182_v29  ;;  %v642_v51 = vand.u32 4294901760, %v3025_v3  ;;  %v520_v59 = vsel %vm488_vm10, %v3187_v19, 0 }
  0xdc   : > { %v414_v32 = vpop.permute.xlu1 %413  ;;  %v788_v60 = vsub.f32 %v3167_v21, %v787_v35  ;;  %v652_v63 = vand.u32 4294901760, %v3091_v42  ;;  %v3208_v12 = vsub.f32 %v3060_v24, %v550_v34  ;;  %v624_v7 = vand.u32 4294901760, %v623_v28 }
  0xdd   : > { %vm436_vm8 = vcmp.eq.s32.totalorder %v414_v32, %v2896_v40  ;;  %v2324_v56 = vpack.c.bf16 %v782_v49, %v775_v41  ;;  %v795_v15 = vsub.f32 %v3182_v29, %v794_v50  ;;  %v3212_v26 = vsub.f32 %v514_v10, %v514_v10 }
  0xde   : > { %2323 = vmatpush3.bf16.msra.mxu1 %v3161_v4  ;;  %2371 = vmatpush3.bf16.msra.mxu0 %v3161_v4  ;;  %v634_v52 = vand.u32 4294901760, %v633_v2  ;;  %v789_v54 = vand.u32 4294901760, %v788_v60  ;;  %v643_v30 = vsub.f32 %v3025_v3, %v642_v51  ;;  %v653_v24 = vsub.f32 %v3091_v42, %v652_v63 }
  0xdf   : > { %2373 = vmatprep.subr.bf16.mxu0 %v2372_v62  ;;  %2325 = vmatprep.subr.bf16.mxu1 %v2324_v56  ;;  %v796_v33 = vand.u32 4294901760, %v795_v15  ;;  %v801_v34 = vand.u32 4294901760, %v3208_v12  ;;  %v3540_v41 = vand.u32 4294901760, %v3053_v20  ;;  %v3222_v49 = vsub.f32 %v520_v59, %v520_v59 }
  0xe0   : > { %v420_v9 = vpop.permute.xlu1 %419  ;;  %v3541_v10 = vmov 0.0   ;;  %v2376_v60 = vpack.c.bf16 %v794_v50, %v787_v35  ;;  %v672_v42 = vand.u32 4294901760, %v3169_v23  ;;  %v654_v35 = vand.u32 4294901760, %v653_v24 }
  0xe1   : > { %2085 = vmatmul.mubr.f32.vlgmr.msra.gmra.mrb[0].mxu1 %v624_v7  ;;  %v3220_v28 = vsub.f32 %v3053_v20, %v3540_v41  ;;  %v3227_v2 = vsel %vm436_vm8, 1.0, %v3541_v10  ;;  %2205 = vmatmul.mubr.f32.vlgmr.msra.gmra.mrb[0].mxu0 %v622_v0  ;;  %v662_v7 = vand.u32 4294901760, %v3113_v46  ;;  %vm438_vm9 = vcmp.eq.s32.totalorder %v420_v9, %v2896_v40 }
  0xe2   : > { %2087 = vmatprep.mubr.f32.mxu1 %v634_v52  ;;  %2327 = vmatpush3.bf16.msra.mxu1 %v2324_v56  ;;  %v2328_v15 = vpack.c.bf16 %v796_v33, %v789_v54  ;;  %v802_v20 = vsub.f32 %v3208_v12, %v801_v34  ;;  %v644_v41 = vand.u32 4294901760, %v643_v30  ;;  %v3542_v52 = vand.u32 4294901760, %v3097_v38 }
  0xe3   : > { %2207 = vmatprep.mubr.f32.mxu0 %v632_v16  ;;  %v808_v59 = vand.u32 4294901760, %v3220_v28  ;;  %2375 = vmatpush3.bf16.msra.mxu0 %v2372_v62  ;;  %v663_v32 = vsub.f32 %v3113_v46, %v662_v7  ;;  %v3543_v54 = vand.u32 4294901760, %v3087_v39  ;;  %v526_v30 = vsel %vm488_vm10, %v3227_v2, 0 }
  0xe4   : > { %v3238_v0 = vsub.f32 %v3097_v38, %v3542_v52  ;;  %2329 = vmatprep.subr.bf16.mxu1 %v2328_v15  ;;  %2377 = vmatprep.subr.bf16.mxu0 %v2376_v60  ;;  %v803_v16 = vand.u32 4294901760, %v802_v20  ;;  %v673_v50 = vsub.f32 %v3169_v23, %v672_v42  ;;  %v682_v56 = vand.u32 4294901760, %v3184_v1 }
  0xe5   : > { %v809_v33 = vsub.f32 %v3220_v28, %v808_v59  ;;  %v3244_v62 = vsub.f32 %v3087_v39, %v3543_v54  ;;  %2088 = vmatmul.mubr.f32.gmra.mrb[2].mxu1 %v644_v41  ;;  %2208 = vmatmul.mubr.f32.gmra.mrb[2].mxu0 %v642_v51  ;;  %v2380_v20 = vpack.c.bf16 %v808_v59, %v801_v34  ;;  %v692_v39 = vand.u32 4294901760, %v3212_v26 }
  0xe6   : > { %v815_v38 = vand.u32 4294901760, %v3238_v0  ;;  %2090 = vmatprep.mubr.f32.mxu1 %v654_v35  ;;  %2331 = vmatpush3.bf16.msra.mxu1 %v2328_v15  ;;  %v3256_v54 = vsel %vm438_vm9, 1.0, %v3541_v10  ;;  %v664_v51 = vand.u32 4294901760, %v663_v32  ;;  %v683_v23 = vsub.f32 %v3184_v1, %v682_v56 }
  0xe7   : > { %v810_v24 = vand.u32 4294901760, %v809_v33  ;;  %v822_v52 = vand.u32 4294901760, %v3244_v62  ;;  %2210 = vmatprep.mubr.f32.mxu0 %v652_v63  ;;  %2379 = vmatpush3.bf16.msra.mxu0 %v2376_v60  ;;  %v674_v15 = vand.u32 4294901760, %v673_v50  ;;  %v702_v59 = vand.u32 4294901760, %v3099_v43 }
  0xe8   : > { %v816_v41 = vsub.f32 %v3238_v0, %v815_v38  ;;  %2381 = vmatprep.subr.bf16.mxu0 %v2380_v20  ;;  %v3262_v33 = vsub.f32 %v526_v30, %v526_v30  ;;  %v693_v63 = vsub.f32 %v3212_v26, %v692_v39  ;;  %v712_v9 = vand.u32 4294901760, %v3222_v49 }
  0xe9   : > { %v2332_v35 = vpack.c.bf16 %v810_v24, %v803_v16  ;;  %v823_v34 = vsub.f32 %v3244_v62, %v822_v52  ;;  %2091 = vmatmul.mubr.f32.gmra.mrb[4].mxu1 %v664_v51  ;;  %2211 = vmatmul.mubr.f32.gmra.mrb[4].mxu0 %v662_v7  ;;  %v532_v10 = vsel %vm488_vm10, %v3256_v54, 0  ;;  %v3270_v32 = vsub.f32 %v3134_v53, %v3134_v53 }
  0xea   : > { %v817_v40 = vand.u32 4294901760, %v816_v41  ;;  %2093 = vmatprep.mubr.f32.mxu1 %v674_v15  ;;  %2213 = vmatprep.mubr.f32.mxu0 %v672_v42  ;;  %v2384_v16 = vpack.c.bf16 %v822_v52, %v815_v38  ;;  %v684_v30 = vand.u32 4294901760, %v683_v23  ;;  %v535_v7 = vsel %vm488_vm10, %v3174_v25, 0 }
  0xeb   : > { %2333 = vmatprep.subr.bf16.mxu1 %v2332_v35  ;;  %v824_v60 = vand.u32 4294901760, %v823_v34  ;;  %2383 = vmatpush3.bf16.msra.mxu0 %v2380_v20  ;;  %v703_v24 = vsub.f32 %v3099_v43, %v702_v59  ;;  %v722_v51 = vand.u32 4294901760, %v3115_v14  ;;  %v3276_v41 = vsub.f32 %v532_v10, %v532_v10 }
  0xec   : > { %2335 = vmatpush3.bf16.msra.mxu1 %v2332_v35  ;;  %2385 = vmatprep.subr.bf16.mxu0 %v2384_v16  ;;  %v694_v15 = vand.u32 4294901760, %v693_v63  ;;  %v713_v53 = vsub.f32 %v3222_v49, %v712_v9  ;;  %v732_v42 = vand.u32 4294901760, %v3262_v33  ;;  %v2340_v23 = vpack.c.bf16 %v3148_v6, %v3140_v61 }
  0xed   : > { %v2336_v50 = vpack.c.bf16 %v824_v60, %v817_v40  ;;  %2094 = vmatmul.mubr.f32.gmra.mrb[6].mxu1 %v684_v30  ;;  %2214 = vmatmul.mubr.f32.gmra.mrb[6].mxu0 %v682_v56  ;;  %v3282_v38 = vsub.f32 %v535_v7, %v535_v7  ;;  %v704_v20 = vand.u32 4294901760, %v703_v24  ;;  %v723_v52 = vsub.f32 %v3115_v14, %v722_v51 }
  0xee   : > { %2096 = vmatprep.mubr.f32.mxu1 %v694_v15  ;;  %2216 = vmatprep.mubr.f32.mxu0 %v692_v39  ;;  %v742_v35 = vand.u32 4294901760, %v3270_v32  ;;  %v714_v34 = vand.u32 4294901760, %v713_v53  ;;  %v733_v56 = vsub.f32 %v3262_v33, %v732_v42  ;;  %v752_v40 = vand.u32 4294901760, %v3276_v41  ;;  %v480_v53 = vld [vmem:[%s3422_s29 + $0x40] sm:$0xff] }
  0xef   : > { %2337 = vmatprep.subr.bf16.mxu1 %v2336_v50  ;;  %2387 = vmatpush3.bf16.msra.mxu0 %v2384_v16  ;;  %v724_v61 = vand.u32 4294901760, %v723_v52  ;;  %v762_v39 = vand.u32 4294901760, %v3282_v38 }
  0xf0   : > { %2339 = vmatpush3.bf16.msra.mxu1 %v2336_v50  ;;  %2389 = vmatprep.subr.bf16.mxu0 %v3066_v27  ;;  %v743_v6 = vsub.f32 %v3270_v32, %v742_v35  ;;  %v734_v63 = vand.u32 4294901760, %v733_v56  ;;  %v753_v10 = vsub.f32 %v3276_v41, %v752_v40  ;;  %v483_v56 = vld [vmem:[%s3422_s29 + $0x58] sm:$0xff] }
  0xf1   : > { %2341 = vmatprep.subr.bf16.mxu1 %v2340_v23  ;;  %2097 = vmatmul.mubr.f32.gmra.mrb[8].mxu1 %v704_v20  ;;  %v763_v16 = vsub.f32 %v3282_v38, %v762_v39 }
  0xf2   : > { %2217 = vmatmul.mubr.f32.gmra.mrb[8].mxu0 %v702_v59  ;;  %2099 = vmatprep.mubr.f32.mxu1 %v714_v34  ;;  %v744_v60 = vand.u32 4294901760, %v743_v6  ;;  %v754_v30 = vand.u32 4294901760, %v753_v10 }
  0xf3   : > { %2219 = vmatprep.mubr.f32.mxu0 %v712_v9  ;;  %v764_v59 = vand.u32 4294901760, %v763_v16  ;;  %v2344_v9 = vpack.c.bf16 %v3182_v29, %v3167_v21  ;;  %v2348_v21 = vpack.c.bf16 %v3220_v28, %v3208_v12 }
  0xf5   : > { %2100 = vmatmul.mubr.f32.gmra.mrb[10].mxu1 %v724_v61  ;;  %v482_v61 = vld [vmem:[%s3422_s29 + $0x50] sm:$0xff] }
  0xf6   : > { %2220 = vmatmul.mubr.f32.gmra.mrb[10].mxu0 %v722_v51  ;;  %2102 = vmatprep.mubr.f32.mxu1 %v734_v63 }
  0xf7   : > { %2222 = vmatprep.mubr.f32.mxu0 %v732_v42 }
  0xf9   : > { %2103 = vmatmul.mubr.f32.gmra.mrb[12].mxu1 %v744_v60 }
  0xfa   : > { %2223 = vmatmul.mubr.f32.gmra.mrb[12].mxu0 %v742_v35  ;;  %2105 = vmatprep.mubr.f32.mxu1 %v754_v30 }
  0xfb   : > { %2225 = vmatprep.mubr.f32.mxu0 %v752_v40 }
  0xfd   : > { %2106 = vmatmul.mubr.f32.gmra.mrb[14].mxu1 %v764_v59  ;;  %v485_v59 = vld [vmem:[%s3422_s29 + $0x68] sm:$0xff] }
  0xfe   : > { %2226 = vmatmul.mubr.f32.gmra.mrb[14].mxu0 %v762_v39  ;;  %2124 = vmatprep.mubr.msk.f32.mxu1 %vm488_vm10, %v3010_v58 }
  0xff   : > { %2244 = vmatprep.mubr.msk.f32.mxu0 %vm488_vm10, %v3010_v58 }
 0x101   : > { %2125 = vmatmul.mubr.msk.f32.vlgmr.msra.gmra.mrb[0].mxu1 %vm488_vm10, %v2957_v31 }
 0x102   : > { %2245 = vmatmul.mubr.msk.f32.vlgmr.msra.gmra.mrb[0].mxu0 %vm488_vm10, %v2957_v31  ;;  %2343 = vmatpush3.bf16.msra.mxu1 %v2340_v23 }
 0x103   : > { %2391 = vmatpush3.bf16.msra.mxu0 %v3066_v27  ;;  %2127 = vmatprep.mubr.msk.f32.mxu1 %vm488_vm10, %v2967_v36  ;;  %v2352_v27 = vpack.c.bf16 %v3244_v62, %v3238_v0  ;;  %v478_v62 = vld [vmem:[%s3422_s29 + $0x30] sm:$0xff] }
 0x104   : > { %2345 = vmatprep.subr.bf16.mxu1 %v2344_v9  ;;  %2247 = vmatprep.mubr.msk.f32.mxu0 %vm488_vm10, %v2967_v36 }
 0x105   : > { %2393 = vmatprep.subr.bf16.mxu0 %v3084_v37  ;;  %2128 = vmatmul.mubr.msk.f32.gmra.mrb[2].mxu1 %vm488_vm10, %v2986_v45 }
 0x106   : > { %2248 = vmatmul.mubr.msk.f32.gmra.mrb[2].mxu0 %vm488_vm10, %v2986_v45  ;;  %2347 = vmatpush3.bf16.msra.mxu1 %v2344_v9 }
 0x107   : > { %2395 = vmatpush3.bf16.msra.mxu0 %v3084_v37  ;;  %2130 = vmatprep.mubr.msk.f32.mxu1 %vm488_vm10, %v3037_v8  ;;  %v3544_v37 = vld [vmem:[#allocation5_spill] sm:$0xff] }
 0x108   : > { %2349 = vmatprep.subr.bf16.mxu1 %v2348_v21  ;;  %2250 = vmatprep.mubr.msk.f32.mxu0 %vm488_vm10, %v3037_v8 }
 0x109   : > { %2397 = vmatprep.subr.bf16.mxu0 %v3128_v55  ;;  %2131 = vmatmul.mubr.msk.f32.gmra.mrb[4].mxu1 %vm488_vm10, %v3046_v17 }
 0x10a   : > { %2251 = vmatmul.mubr.msk.f32.gmra.mrb[4].mxu0 %vm488_vm10, %v3046_v17  ;;  %2351 = vmatpush3.bf16.msra.mxu1 %v2348_v21  ;;  %v484_v21 = vld [vmem:[%s3422_s29 + $0x60] sm:$0xff] }
 0x10b   : > { %2399 = vmatpush3.bf16.msra.mxu0 %v3128_v55  ;;  %2133 = vmatprep.mubr.msk.f32.mxu1 %vm488_vm10, %v3104_v13 }
 0x10c   : > { %2353 = vmatprep.subr.bf16.mxu1 %v2352_v27  ;;  %2253 = vmatprep.mubr.msk.f32.mxu0 %vm488_vm10, %v3104_v13 }
 0x10d   : > { %2401 = vmatprep.subr.bf16.mxu0 %v3161_v4  ;;  %2134 = vmatmul.mubr.msk.f32.gmra.mrb[6].mxu1 %vm488_vm10, %v3118_v48 }
 0x10e   : > { %2254 = vmatmul.mubr.msk.f32.gmra.mrb[6].mxu0 %vm488_vm10, %v3118_v48  ;;  %2355 = vmatpush3.bf16.msra.mxu1 %v2352_v27 }
 0x10f   : > { %2403 = vmatpush3.bf16.msra.mxu0 %v3161_v4  ;;  %2136 = vmatprep.mubr.msk.f32.mxu1 %vm488_vm10, %v3152_v5 }
 0x110   : > { %2256 = vmatprep.mubr.msk.f32.mxu0 %vm488_vm10, %v3152_v5 }
 0x111   : > { %2137 = vmatmul.mubr.msk.f32.gmra.mrb[8].mxu1 %vm488_vm10, %v3040_v11 }
 0x112   : > { %2257 = vmatmul.mubr.msk.f32.gmra.mrb[8].mxu0 %vm488_vm10, %v3040_v11  ;;  %2139 = vmatprep.mubr.msk.f32.mxu1 %vm488_vm10, %v3187_v19 }
 0x113   : > { %2259 = vmatprep.mubr.msk.f32.mxu0 %vm488_vm10, %v3187_v19 }
 0x115   : > { %2140 = vmatmul.mubr.msk.f32.gmra.mrb[10].mxu1 %vm488_vm10, %v3049_v18 }
 0x116   : > { %2260 = vmatmul.mubr.msk.f32.gmra.mrb[10].mxu0 %vm488_vm10, %v3049_v18  ;;  %2142 = vmatprep.mubr.msk.f32.mxu1 %vm488_vm10, %v3227_v2 }
 0x117   : > { %2262 = vmatprep.mubr.msk.f32.mxu0 %vm488_vm10, %v3227_v2 }
 0x119   : > { %2143 = vmatmul.mubr.msk.f32.gmra.mrb[12].mxu1 %vm488_vm10, %v3109_v44 }
 0x11a   : > { %2263 = vmatmul.mubr.msk.f32.gmra.mrb[12].mxu0 %vm488_vm10, %v3109_v44  ;;  %2145 = vmatprep.mubr.msk.f32.mxu1 %vm488_vm10, %v3256_v54 }
 0x11b   : > { %2265 = vmatprep.mubr.msk.f32.mxu0 %vm488_vm10, %v3256_v54 }
 0x11d   : > { %2146 = vmatmul.mubr.msk.f32.gmra.mrb[14].mxu1 %vm488_vm10, %v3174_v25 }
 0x11e   : > { %2266 = vmatmul.mubr.msk.f32.gmra.mrb[14].mxu0 %vm488_vm10, %v3174_v25  ;;  %2164 = vmatprep.mubr.f32.mxu1 %v3057_v22  ;;  %v474_v22 = vld [vmem:[%s3422_s29 + $0x10] sm:$0xff] }
 0x11f   : > { %2284 = vmatprep.mubr.msk.f32.mxu0 %vm488_vm10, %v3010_v58 }
 0x121   : > { %2165 = vmatmul.mubr.f32.vlgmr.msra.gmra.mrb[0].mxu1 %v2996_v47 }
 0x122   : > { %2285 = vmatmul.mubr.msk.f32.vlgmr.msra.gmra.mrb[0].mxu0 %vm488_vm10, %v2957_v31  ;;  %2167 = vmatprep.mubr.f32.mxu1 %v3007_v57  ;;  %v3545_v31 = vld [vmem:[#allocation6_spill] sm:$0xff] }
 0x123   : > { %2287 = vmatprep.mubr.msk.f32.mxu0 %vm488_vm10, %v2967_v36  ;;  %v473_v36 = vld [vmem:[%s3422_s29 + $0x8] sm:$0xff] }
 0x125   : > { %2168 = vmatmul.mubr.f32.gmra.mrb[2].mxu1 %v3025_v3 }
 0x126   : > { %2288 = vmatmul.mubr.msk.f32.gmra.mrb[2].mxu0 %vm488_vm10, %v2986_v45  ;;  %2170 = vmatprep.mubr.f32.mxu1 %v3544_v37  ;;  %v472_v45 = vld [vmem:[%s3422_s29] sm:$0xff] }
 0x127   : > { %2290 = vmatprep.mubr.msk.f32.mxu0 %vm488_vm10, %v3037_v8 }
 0x129   : > { %2171 = vmatmul.mubr.f32.gmra.mrb[4].mxu1 %v3113_v46 }
 0x12a   : > { %2291 = vmatmul.mubr.msk.f32.gmra.mrb[4].mxu0 %vm488_vm10, %v3046_v17  ;;  %2173 = vmatprep.mubr.f32.mxu1 %v3545_v31  ;;  %v475_v17 = vld [vmem:[%s3422_s29 + $0x18] sm:$0xff] }
 0x12b   : > { %2293 = vmatprep.mubr.msk.f32.mxu0 %vm488_vm10, %v3104_v13 }
 0x12d   : > { %2174 = vmatmul.mubr.f32.gmra.mrb[6].mxu1 %v3184_v1 }
 0x12e   : > { %2294 = vmatmul.mubr.msk.f32.gmra.mrb[6].mxu0 %vm488_vm10, %v3118_v48  ;;  %2176 = vmatprep.mubr.f32.mxu1 %v3212_v26 }
 0x12f   : > { %2296 = vmatprep.mubr.msk.f32.mxu0 %vm488_vm10, %v3152_v5  ;;  %v477_v5 = vld [vmem:[%s3422_s29 + $0x28] sm:$0xff] }
 0x131   : > { %2177 = vmatmul.mubr.f32.gmra.mrb[8].mxu1 %v3099_v43 }
 0x132   : > { %2297 = vmatmul.mubr.msk.f32.gmra.mrb[8].mxu0 %vm488_vm10, %v3040_v11  ;;  %2179 = vmatprep.mubr.f32.mxu1 %v3222_v49 }
 0x133   : > { %2299 = vmatprep.mubr.msk.f32.mxu0 %vm488_vm10, %v3187_v19 }
 0x135   : > { %2180 = vmatmul.mubr.f32.gmra.mrb[10].mxu1 %v3115_v14 }
 0x136   : > { %2300 = vmatmul.mubr.msk.f32.gmra.mrb[10].mxu0 %vm488_vm10, %v3049_v18  ;;  %2182 = vmatprep.mubr.f32.mxu1 %v3262_v33 }
 0x137   : > { %2302 = vmatprep.mubr.msk.f32.mxu0 %vm488_vm10, %v3227_v2  ;;  %v479_v2 = vld [vmem:[%s3422_s29 + $0x38] sm:$0xff] }
 0x139   : > { %2183 = vmatmul.mubr.f32.gmra.mrb[12].mxu1 %v3270_v32 }
 0x13a   : > { %2303 = vmatmul.mubr.msk.f32.gmra.mrb[12].mxu0 %vm488_vm10, %v3109_v44  ;;  %2185 = vmatprep.mubr.f32.mxu1 %v3276_v41  ;;  %v481_v41 = vld [vmem:[%s3422_s29 + $0x48] sm:$0xff] }
 0x13b   : > { %2305 = vmatprep.mubr.msk.f32.mxu0 %vm488_vm10, %v3256_v54 }
 0x13d   : > { %2186 = vmatmul.mubr.f32.gmra.mrb[14].mxu1 %v3282_v38 }
 0x13e   : > { %2306 = vmatmul.mubr.msk.f32.gmra.mrb[14].mxu0 %vm488_vm10, %v3174_v25  ;;  %v476_v25 = vld [vmem:[%s3422_s29 + $0x20] sm:$0xff] }
 0x1f4   : > { %v2166_v47 = vpop.f32.mrb[0].mxu1 }
 0x1f5   : > { %v2286_v57 = vpop.f32.mrb[0].mxu0  ;;  %v2404_v58 = vadd.f32 %v2166_v47, %v473_v36  ;;  %v1055_v3 = vpop.f32.mrb[1].mxu1 }
 0x1f6   : > { %v1625_v8 = vpop.f32.mrb[1].mxu0  ;;  %v2406_v11 = vadd.f32 %v1055_v3, %v472_v45 }
 0x1f7   : > { %v2405_v18 = vadd.f32 %v2404_v58, %v2286_v57  ;;  %v487_v58 = vld [vmem:[%s3422_s29 + $0x78] sm:$0xff] }
 0x1f8   : > { %v2407_v43 = vadd.f32 %v2406_v11, %v1625_v8  ;;  %v2169_v13 = vpop.f32.mrb[2].mxu1  ;;  %v486_v8 = vld [vmem:[%s3422_s29 + $0x70] sm:$0xff] }
 0x1f9   : > { %v2289_v44 = vpop.f32.mrb[2].mxu0  ;;  %1720 = vst [vmem:[%s3431_s7 + $0x8] sm:$0xff] %v2405_v18  ;;  %v2408_v46 = vadd.f32 %v2169_v13, %v475_v17  ;;  %v1069_v14 = vpop.f32.mrb[3].mxu1 }
 0x1fa   : > { %v1637_v48 = vpop.f32.mrb[3].mxu0  ;;  %1719 = vst [vmem:[%s3431_s7] sm:$0xff] %v2407_v43  ;;  %v2410_v55 = vadd.f32 %v1069_v14, %v474_v22 }
 0x1fb   : > { %v2409_v4 = vadd.f32 %v2408_v46, %v2289_v44 }
 0x1fc   : > { %v2411_v29 = vadd.f32 %v2410_v55, %v1637_v48  ;;  %v2172_v1 = vpop.f32.mrb[4].mxu1 }
 0x1fd   : > { %v2292_v19 = vpop.f32.mrb[4].mxu0  ;;  %1722 = vst [vmem:[%s3431_s7 + $0x18] sm:$0xff] %v2409_v4  ;;  %v2412_v12 = vadd.f32 %v2172_v1, %v477_v5  ;;  %v1083_v26 = vpop.f32.mrb[5].mxu1 }
 0x1fe   : > { %v1649_v28 = vpop.f32.mrb[5].mxu0  ;;  %1721 = vst [vmem:[%s3431_s7 + $0x10] sm:$0xff] %v2411_v29  ;;  %v2414_v49 = vadd.f32 %v1083_v26, %v476_v25 }
 0x1ff   : > { %v2413_v0 = vadd.f32 %v2412_v12, %v2292_v19 }
 0x200   : > { %v2415_v54 = vadd.f32 %v2414_v49, %v1649_v28  ;;  %v2175_v33 = vpop.f32.mrb[6].mxu1 }
 0x201   : > { %v2295_v32 = vpop.f32.mrb[6].mxu0  ;;  %1724 = vst [vmem:[%s3431_s7 + $0x28] sm:$0xff] %v2413_v0  ;;  %v2416_v7 = vadd.f32 %v2175_v33, %v479_v2  ;;  %v1097_v50 = vpop.f32.mrb[7].mxu1 }
 0x202   : > { %v1661_v24 = vpop.f32.mrb[7].mxu0  ;;  %1723 = vst [vmem:[%s3431_s7 + $0x20] sm:$0xff] %v2415_v54  ;;  %v2418_v51 = vadd.f32 %v1097_v50, %v478_v62 }
 0x203   : > { %v2417_v15 = vadd.f32 %v2416_v7, %v2295_v32 }
 0x204   : > { %v2419_v42 = vadd.f32 %v2418_v51, %v1661_v24  ;;  %v2178_v23 = vpop.f32.mrb[8].mxu1 }
 0x205   : > { %v2298_v38 = vpop.f32.mrb[8].mxu0  ;;  %1726 = vst [vmem:[%s3431_s7 + $0x38] sm:$0xff] %v2417_v15  ;;  %v2420_v20 = vadd.f32 %v2178_v23, %v481_v41  ;;  %v1111_v52 = vpop.f32.mrb[9].mxu1 }
 0x206   : > { %v1673_v35 = vpop.f32.mrb[9].mxu0  ;;  %1725 = vst [vmem:[%s3431_s7 + $0x30] sm:$0xff] %v2419_v42  ;;  %v2422_v34 = vadd.f32 %v1111_v52, %v480_v53 }
 0x207   : > { %v2421_v40 = vadd.f32 %v2420_v20, %v2298_v38 }
 0x208   : > { %v2423_v6 = vadd.f32 %v2422_v34, %v1673_v35  ;;  %v2181_v39 = vpop.f32.mrb[10].mxu1 }
 0x209   : > { %v2301_v63 = vpop.f32.mrb[10].mxu0  ;;  %1728 = vst [vmem:[%s3431_s7 + $0x48] sm:$0xff] %v2421_v40  ;;  %v2424_v10 = vadd.f32 %v2181_v39, %v483_v56  ;;  %v1125_v60 = vpop.f32.mrb[11].mxu1 }
 0x20a   : > { %v1685_v16 = vpop.f32.mrb[11].mxu0  ;;  %1727 = vst [vmem:[%s3431_s7 + $0x40] sm:$0xff] %v2423_v6  ;;  %v2426_v30 = vadd.f32 %v1125_v60, %v482_v61 }
 0x20b   : > { %v2425_v9 = vadd.f32 %v2424_v10, %v2301_v63 }
 0x20c   : > { %v2427_v27 = vadd.f32 %v2426_v30, %v1685_v16  ;;  %v2184_v37 = vpop.f32.mrb[12].mxu1 }
 0x20d   : > { %v2304_v31 = vpop.f32.mrb[12].mxu0  ;;  %1730 = vst [vmem:[%s3431_s7 + $0x58] sm:$0xff] %v2425_v9  ;;  %v2428_v36 = vadd.f32 %v2184_v37, %v485_v59  ;;  %v1139_v45 = vpop.f32.mrb[13].mxu1 }
 0x20e   : > { %v1697_v47 = vpop.f32.mrb[13].mxu0  ;;  %1729 = vst [vmem:[%s3431_s7 + $0x50] sm:$0xff] %v2427_v27  ;;  %v2430_v57 = vadd.f32 %v1139_v45, %v484_v21 }
 0x20f   : > { %v2429_v3 = vadd.f32 %v2428_v36, %v2304_v31 }
 0x210   : > { %v2431_v11 = vadd.f32 %v2430_v57, %v1697_v47  ;;  %v2187_v17 = vpop.f32.mrb[14].mxu1 }
 0x211   : > { %v2307_v18 = vpop.f32.mrb[14].mxu0  ;;  %1732 = vst [vmem:[%s3431_s7 + $0x68] sm:$0xff] %v2429_v3  ;;  %v2432_v22 = vadd.f32 %v2187_v17, %v487_v58  ;;  %v1153_v43 = vpop.f32.mrb[15].mxu1 }
 0x212   : > { %v1709_v13 = vpop.f32.mrb[15].mxu0  ;;  %1731 = vst [vmem:[%s3431_s7 + $0x60] sm:$0xff] %v2431_v11  ;;  %v2434_v44 = vadd.f32 %v1153_v43, %v486_v8 }
 0x213   : > { %v2433_v46 = vadd.f32 %v2432_v22, %v2307_v18 }
 0x214   : > { %v2435_v14 = vadd.f32 %v2434_v44, %v1709_v13 }
 0x215   : > { %1734 = vst [vmem:[%s3431_s7 + $0x78] sm:$0xff] %v2433_v46 }
 0x216   : > { %1733 = vst [vmem:[%s3431_s7 + $0x70] sm:$0xff] %v2435_v14 }
 0x217   : > { %2624 = shalt.err (!%p2621_p7)
}
 0x218   : > { %s2625_s29 = scalar_lea.hbm %s3464_s11, 2048  ;;  %s2629_s7 = scalar_lea.hbm %s3528_s3, 12288 }
 0x219   : > { %p2626_p9 = scmp.ne.s32.totalorder %s3464_s11, %s2625_s29  ;;  %p2630_p12 = scmp.lt.u32.totalorder %s3464_s11, %s3528_s3 }
 0x21a   : > { %p2631_p13 = scmp.lt.u32.totalorder %s2629_s7, %s2625_s29  ;;  %p2633_p1 = scmp.lt.u32.totalorder %s2625_s29, %s3464_s11 }
 0x21b   : > { %p2627_p10 = pnand %p2626_p9, %p2783_p3 }
 0x21c   : > { %p2632_p0 = por %p2631_p13, %p2630_p12 }
 0x21d   : > { %p2628_p11 = pneg %p2627_p10 }
 0x21e   : > { %p2634_p2 = por %p2633_p1, %p2632_p0 }
 0x220   : > { %p2635_p4 = pnand %p2634_p2, %p2628_p11 }
 0x222   : > { %2638 = shalt.err (!%p2635_p4)
}
 0x223   : > { %s2710_s15 = smov 128   ;;  %s2711_s9 = smov 8  }
 0x224   : > { %2502 = dma.vmem_to_hbm [thread:$0]  (%p2783_p3), %s3467_s6, 2048, %s3464_s11, %s3473_s20, %s2710_s15, %s2710_s15, %s2711_s9  }
 0x225 PF: > { %p2508_p5 = scmp.ge.s32.totalorder %s2705_s19, 2  ;;  %s1766_s10 = sand.u32 1, %s2677_s12  }
 0x226   : > { %s1767_s21 = scalar_lea.sflag [#allocation3], %s1766_s10 }
 0x227   : > { %p2505_p6 = pnand %p2508_p5, %p2792_p8 }
 0x229   : > { %2672 = dma.done.wait (!%p2505_p6), %s1767_s21, 2048  }
 0x22a   : > { %2674 = vsyncadd (!%p2505_p6), %s1767_s21, 4294965248  ;;  %s16_s19 = sadd.s32 1, %s2705_s19   ;;  %s3546_s12 = smov %s2681_s13 }
 0x22b   : > { %p13_p7 = scmp.ge.s32.totalorder %s16_s19, 8   ;;  %s3547_s13 = smov %s2685_s14 }
 0x22c   : > { %s3548_s14 = smov %s2801_s30  ;;  %s3549_s15 = smov %s2697_s17 }
 0x22d   : > { %s3550_s16 = smov %s2701_s18  ;;  %s3551_s17 = smov %s3554_s22 }
 0x22e   : > { %s3552_s18 = smov %s3558_s23  ;;  %15 = sbr.rel (!%p13_p7) target bundleno = 5 (0x5), region = 70 }
 0x235   :  { %1772 = vsyncpa [#allocation3], 1 }
 0x236   :  { %1774 = vsyncpa [#allocation3 + $0x1], 1 }

</bundles_post_ra>
